<compile_context>
chip_gen: v5e
topology: v5e:2x2
jax: 0.10.0
libtpu: 0.0.40
codegen_flags: <defaults>
</compile_context>

<pallas_src>
import functools

import jax
import jax.numpy as jnp
import numpy as np
from jax import lax
from jax.experimental import pallas as pl
from jax.experimental.pallas import tpu as pltpu

ELU_ALPHA = 10.0 / (10.0 - 1.0)   # nn.ELU(alpha=10/9)
BN_EPS = 1e-5
ACT_DTYPE = jnp.bfloat16          # inter-layer activation dtype


# ----------------------------------------------------------------------------
# Pallas kernels: full-K matmul with fused BN scale/shift (+ optional residual
# add) and ELU(alpha=10/9) in the epilogue.  Single grid axis over M tiles.
# ----------------------------------------------------------------------------
def _elu_f32(y):
    return jnp.where(y > 0, y, ELU_ALPHA * (jnp.exp(y) - 1.0))


def _mm_bn_act_kernel(a_ref, b_ref, s_ref, c_ref, o_ref, *, apply_elu):
    y = jnp.dot(a_ref[...], b_ref[...], preferred_element_type=jnp.float32)
    y = y * s_ref[...] + c_ref[...]
    if apply_elu:
        y = _elu_f32(y)
    o_ref[...] = y.astype(o_ref.dtype)


def _mm_bn_res_elu_kernel(a_ref, b_ref, s_ref, c_ref, r_ref, o_ref):
    # conv2 of a BasicBlock: BN + residual add + ELU fused into the epilogue.
    y = jnp.dot(a_ref[...], b_ref[...], preferred_element_type=jnp.float32)
    y = y * s_ref[...] + c_ref[...] + r_ref[...].astype(jnp.float32)
    o_ref[...] = _elu_f32(y).astype(o_ref.dtype)


def _mm_dual_kernel(a_ref, b1_ref, s1_ref, c1_ref, b2_ref, s2_ref, c2_ref,
                    o1_ref, o2_ref):
    # Shared-A dual matmul: conv1 (BN+ELU) and downsample conv (BN only) of a
    # stride-2 block consume the same stride-2 im2col matrix.
    a = a_ref[...]
    y1 = jnp.dot(a, b1_ref[...], preferred_element_type=jnp.float32)
    y1 = y1 * s1_ref[...] + c1_ref[...]
    o1_ref[...] = _elu_f32(y1).astype(o1_ref.dtype)
    y2 = jnp.dot(a, b2_ref[...], preferred_element_type=jnp.float32)
    y2 = y2 * s2_ref[...] + c2_ref[...]
    o2_ref[...] = y2.astype(o2_ref.dtype)


def _pick_tm(m, cap=2048):
    """Largest M tile <= cap that exactly divides M and is a multiple of 8.

    Falls back to the full M (grid of 1) if no such divisor exists, which
    always satisfies the (8,128) block constraint ("equal to full dim").
    """
    if m <= cap:
        return m
    best = 0
    for d in range(8, cap + 1, 8):
        if m % d == 0:
            best = d
    return best if best > 0 else m


_COMPILER_PARAMS = pltpu.CompilerParams(dimension_semantics=("parallel",))


def matmul_bn_act(cols, bmat, scale, shift, *, apply_elu):
    m, k = cols.shape
    _, n = bmat.shape
    tm = _pick_tm(m)
    return pl.pallas_call(
        functools.partial(_mm_bn_act_kernel, apply_elu=apply_elu),
        out_shape=jax.ShapeDtypeStruct((m, n), ACT_DTYPE),
        grid_spec=pltpu.PrefetchScalarGridSpec(
            num_scalar_prefetch=0,
            grid=(m // tm,),
            in_specs=[
                pl.BlockSpec((tm, k), lambda i: (i, 0)),
                pl.BlockSpec((k, n), lambda i: (0, 0)),
                pl.BlockSpec((1, n), lambda i: (0, 0)),
                pl.BlockSpec((1, n), lambda i: (0, 0)),
            ],
            out_specs=pl.BlockSpec((tm, n), lambda i: (i, 0)),
        ),
        compiler_params=_COMPILER_PARAMS,
    )(cols, bmat, scale, shift)


def matmul_bn_res_elu(cols, bmat, scale, shift, residual):
    m, k = cols.shape
    _, n = bmat.shape
    tm = _pick_tm(m)
    return pl.pallas_call(
        _mm_bn_res_elu_kernel,
        out_shape=jax.ShapeDtypeStruct((m, n), ACT_DTYPE),
        grid_spec=pltpu.PrefetchScalarGridSpec(
            num_scalar_prefetch=0,
            grid=(m // tm,),
            in_specs=[
                pl.BlockSpec((tm, k), lambda i: (i, 0)),
                pl.BlockSpec((k, n), lambda i: (0, 0)),
                pl.BlockSpec((1, n), lambda i: (0, 0)),
                pl.BlockSpec((1, n), lambda i: (0, 0)),
                pl.BlockSpec((tm, n), lambda i: (i, 0)),
            ],
            out_specs=pl.BlockSpec((tm, n), lambda i: (i, 0)),
        ),
        compiler_params=_COMPILER_PARAMS,
    )(cols, bmat, scale, shift, residual)


def matmul_dual(cols, p1, p2):
    m, k = cols.shape
    n1 = p1['bmat'].shape[1]
    n2 = p2['bmat'].shape[1]
    tm = _pick_tm(m)
    return pl.pallas_call(
        _mm_dual_kernel,
        out_shape=(jax.ShapeDtypeStruct((m, n1), ACT_DTYPE),
                   jax.ShapeDtypeStruct((m, n2), ACT_DTYPE)),
        grid_spec=pltpu.PrefetchScalarGridSpec(
            num_scalar_prefetch=0,
            grid=(m // tm,),
            in_specs=[
                pl.BlockSpec((tm, k), lambda i: (i, 0)),
                pl.BlockSpec((k, n1), lambda i: (0, 0)),
                pl.BlockSpec((1, n1), lambda i: (0, 0)),
                pl.BlockSpec((1, n1), lambda i: (0, 0)),
                pl.BlockSpec((k, n2), lambda i: (0, 0)),
                pl.BlockSpec((1, n2), lambda i: (0, 0)),
                pl.BlockSpec((1, n2), lambda i: (0, 0)),
            ],
            out_specs=[pl.BlockSpec((tm, n1), lambda i: (i, 0)),
                       pl.BlockSpec((tm, n2), lambda i: (i, 0))],
        ),
        compiler_params=_COMPILER_PARAMS,
    )(cols, p1['bmat'], p1['scale'], p1['shift'],
      p2['bmat'], p2['scale'], p2['shift'])


# ----------------------------------------------------------------------------
# Plain-JAX glue: im2col, maxpool
# ----------------------------------------------------------------------------
def _im2col(x, kh, kw, stride, pad):
    # x: NHWC (bf16).  Tap ordering = (i, j) outer, channel inner — matches the
    # (kh, kw, C, O) weight reshape done in _prep_conv.
    # TODO(synk): the patch matrix is still materialized in HBM (9x / 49x the
    #             activation volume); an in-kernel tap gather would remove it
    #             (small at batch=1, inflate=1 so not worth the complexity).
    x = jnp.pad(x, ((0, 0), (pad, pad), (pad, pad), (0, 0)))
    n, h, w, c = x.shape
    oh = (h - kh) // stride + 1
    ow = (w - kw) // stride + 1
    patches = []
    for i in range(kh):
        for j in range(kw):
            patches.append(x[:, i:i + stride * oh:stride, j:j + stride * ow:stride, :])
    cols = jnp.concatenate(patches, axis=-1)          # (N, oh, ow, kh*kw*C)
    return cols.reshape(n * oh * ow, kh * kw * c), oh, ow


def conv_bn_act(x, prep, *, stride, pad, apply_elu):
    n = x.shape[0]
    cols, oh, ow = _im2col(x, prep['kh'], prep['kw'], stride, pad)
    y = matmul_bn_act(cols, prep['bmat'], prep['scale'], prep['shift'],
                      apply_elu=apply_elu)
    return y.reshape(n, oh, ow, -1)


def maxpool_3x3_s2(x):  # NHWC
    return lax.reduce_window(
        x, jnp.finfo(x.dtype).min, lax.max,
        window_dimensions=(1, 3, 3, 1),
        window_strides=(1, 2, 2, 1),
        padding=((0, 0), (1, 1), (1, 1), (0, 0)))


# ----------------------------------------------------------------------------
# Model config + raw parameter init (PyTorch-layout weights)
# ----------------------------------------------------------------------------
INFLATE = 1                          # PyTorch default is 4; kept small
NUM_CLASSES = 10
DEPTH = [2, 2, 2, 2]
LAYER_CFG = [(16 * INFLATE, DEPTH[0], 1),
             (32 * INFLATE, DEPTH[1], 2),
             (64 * INFLATE, DEPTH[2], 2),
             (128 * INFLATE, DEPTH[3], 2)]


def _conv_init(key, shape):
    fan_in = shape[1] * shape[2] * shape[3]
    return jax.random.normal(key, shape, jnp.float32) / jnp.sqrt(float(fan_in))


def _bn_init(key, c):
    k1, k2, k3, k4 = jax.random.split(key, 4)
    return dict(
        gamma=1.0 + 0.1 * jax.random.normal(k1, (c,), jnp.float32),
        beta=0.1 * jax.random.normal(k2, (c,), jnp.float32),
        mean=0.05 * jax.random.normal(k3, (c,), jnp.float32),
        var=1.0 + 0.1 * jax.random.uniform(k4, (c,), jnp.float32),
    )


def init_params(key):
    c0 = 16 * INFLATE
    keys = jax.random.split(key, 4 + len(LAYER_CFG))
    params = {}
    params['conv1_w'] = _conv_init(keys[0], (c0, 3, 7, 7))   # stem conv, no bias
    params['bn1'] = _bn_init(keys[1], c0)

    layers = []
    in_c = c0
    for li, (out_c, blocks, stride) in enumerate(LAYER_CFG):
        lkey = keys[2 + li]
        blk_params = []
        for bi in range(blocks):
            bkey = jax.random.fold_in(lkey, bi)
            ks = jax.random.split(bkey, 9)
            has_ds = bi == 0 and (stride != 1 or in_c != out_c)
            p = dict(
                conv1_w=_conv_init(ks[0], (out_c, in_c if bi == 0 else out_c, 3, 3)),
                conv1_b=0.01 * jax.random.normal(ks[1], (out_c,), jnp.float32),
                bn1=_bn_init(ks[2], out_c),
                conv2_w=_conv_init(ks[3], (out_c, out_c, 3, 3)),
                conv2_b=0.01 * jax.random.normal(ks[4], (out_c,), jnp.float32),
                bn2=_bn_init(ks[5], out_c),
            )
            if has_ds:
                p['ds_w'] = _conv_init(ks[6], (out_c, in_c, 3, 3))
                p['ds_b'] = 0.01 * jax.random.normal(ks[7], (out_c,), jnp.float32)
                p['ds_bn'] = _bn_init(ks[8], out_c)
            blk_params.append(p)
        in_c = out_c
        layers.append(blk_params)
    params['layers'] = layers

    kfc1, kfc2 = jax.random.split(keys[2 + len(LAYER_CFG)], 2)
    params['fc_w'] = _conv_init(kfc1, (NUM_CLASSES, 128 * INFLATE, 1, 1))[:, :, 0, 0]
    params['fc_b'] = 0.01 * jax.random.normal(kfc2, (NUM_CLASSES,), jnp.float32)
    return params


# ----------------------------------------------------------------------------
# One-time parameter prep (hoisted out of the hot path)
# ----------------------------------------------------------------------------
def _prep_conv(w, conv_b, bn, *, binarize):
    o_ch, c_ch, kh, kw = w.shape
    if binarize:
        # TODO(synk): hypernetwork weight generation approximated (see header).
        w_scale = jnp.mean(jnp.abs(w), axis=(1, 2, 3), keepdims=True)
        w = jnp.where(w >= 0, 1.0, -1.0) * w_scale
    bmat = jnp.transpose(w, (2, 3, 1, 0)).reshape(kh * kw * c_ch, o_ch)
    scale = bn['gamma'] / jnp.sqrt(bn['var'] + BN_EPS)
    cb = conv_b if conv_b is not None else jnp.zeros((o_ch,), jnp.float32)
    shift = (cb - bn['mean']) * scale + bn['beta']
    return dict(bmat=bmat.astype(ACT_DTYPE),
                scale=scale.reshape(1, o_ch).astype(jnp.float32),
                shift=shift.reshape(1, o_ch).astype(jnp.float32),
                kh=kh, kw=kw)


def prepare_params(params):
    fast = {'stem': _prep_conv(params['conv1_w'], None, params['bn1'],
                               binarize=False)}
    layers = []
    for blk_params in params['layers']:
        blks = []
        for p in blk_params:
            bp = {
                'conv1': _prep_conv(p['conv1_w'], p['conv1_b'], p['bn1'],
                                    binarize=True),
                'conv2': _prep_conv(p['conv2_w'], p['conv2_b'], p['bn2'],
                                    binarize=True),
            }
            if 'ds_w' in p:
                bp['ds'] = _prep_conv(p['ds_w'], p['ds_b'], p['ds_bn'],
                                      binarize=True)
            blks.append(bp)
        layers.append(blks)
    fast['layers'] = layers
    fast['fc_wT'] = params['fc_w'].T.astype(jnp.float32)
    fast['fc_b'] = params['fc_b'].astype(jnp.float32)
    return fast


# ----------------------------------------------------------------------------
# Forward pass
# ----------------------------------------------------------------------------
def basic_block(x, bp, stride):
    n = x.shape[0]
    if 'ds' in bp:
        # The PyTorch module hard-codes the downsample conv to stride 2, and
        # with this config a downsample only appears on stride-2 blocks, so
        # conv1 and the downsample conv share one stride-2 im2col / A stream.
        assert stride == 2
        cols, oh, ow = _im2col(x, 3, 3, stride, 1)
        out, residual = matmul_dual(cols, bp['conv1'], bp['ds'])
        out_c = bp['conv1']['bmat'].shape[1]
        out = out.reshape(n, oh, ow, out_c)
        residual = residual.reshape(n, oh, ow, -1)
    else:
        residual = x
        out = conv_bn_act(x, bp['conv1'], stride=stride, pad=1, apply_elu=True)

    # conv2: BN + residual add + ELU fused in the Pallas epilogue.
    cols2, oh, ow = _im2col(out, 3, 3, 1, 1)
    y = matmul_bn_res_elu(cols2, bp['conv2']['bmat'], bp['conv2']['scale'],
                          bp['conv2']['shift'],
                          residual.reshape(-1, residual.shape[-1]))
    return y.reshape(n, oh, ow, -1)


def resnet_forward(x_nchw, fast):
    # NCHW (PyTorch) -> NHWC internal layout, bf16 activations.
    x = jnp.transpose(x_nchw, (0, 2, 3, 1)).astype(ACT_DTYPE)

    # stem: conv7x7/2 + BN + ELU (fused) + maxpool3x3/2
    x = conv_bn_act(x, fast['stem'], stride=2, pad=3, apply_elu=True)
    x = maxpool_3x3_s2(x)

    for (out_c, blocks, stride), blk in zip(LAYER_CFG, fast['layers']):
        for bi in range(blocks):
            x = basic_block(x, blk[bi], stride if bi == 0 else 1)

    # AvgPool2d(7): final feature map is exactly 7x7 -> global mean (f32).
    feat = jnp.mean(x.astype(jnp.float32), axis=(1, 2))       # (N, 128*inflate)

    # Final FC (128x10): far too small for the MXU — plain XLA dot is faster.
    return feat @ fast['fc_wT'] + fast['fc_b']


# ----------------------------------------------------------------------------
# Small self-check of the fused Pallas matmul against a jnp reference
# ----------------------------------------------------------------------------
def _self_check():
    k1, k2, k3, k4 = jax.random.split(jax.random.PRNGKey(42), 4)
    m, k, n = 256, 144, 32
    a = jax.random.normal(k1, (m, k), jnp.float32).astype(ACT_DTYPE)
    b = jax.random.normal(k2, (k, n), jnp.float32).astype(ACT_DTYPE)
    s = 1.0 + 0.1 * jax.random.normal(k3, (1, n), jnp.float32)
    c = 0.1 * jax.random.normal(k4, (1, n), jnp.float32)
    got = jax.jit(lambda a, b, s, c: matmul_bn_act(a, b, s, c, apply_elu=True))(
        a, b, s, c).astype(jnp.float32)
    ref = jnp.dot(a, b, preferred_element_type=jnp.float32) * s + c
    ref = jnp.where(ref > 0, ref, ELU_ALPHA * (jnp.exp(ref) - 1.0))
    np.testing.assert_allclose(np.asarray(got), np.asarray(ref),
                               rtol=2e-2, atol=2e-2)


if __name__ == "__main__":
    _self_check()

    key = jax.random.PRNGKey(0)
    kp, kx = jax.random.split(key)
    params = init_params(kp)
    fast_params = prepare_params(params)   # one-time weight prep (hoisted)

    # Spatial 224 is required so the final feature map is 7x7 for AvgPool2d(7);
    # batch=1 and inflate=1 keep the example small.
    x = jax.random.normal(kx, (1, 3, 224, 224), jnp.float32)

    fwd = jax.jit(lambda inp: resnet_forward(inp, fast_params))
    out = jax.block_until_ready(fwd(x))
    assert out.shape == (1, NUM_CLASSES)
    assert bool(jnp.all(jnp.isfinite(out)))
    print("KERNEL_OK")
</pallas_src>

<mosaic_0001>
module attributes {stable_mosaic.version = 11 : i64} {
  func.func @_mm_bn_act_kernel(%arg0: i32, %arg1: memref<256x144xbf16, #tpu.memory_space<vmem>>, %arg2: memref<144x32xbf16, #tpu.memory_space<vmem>>, %arg3: memref<1x32xf32, #tpu.memory_space<vmem>>, %arg4: memref<1x32xf32, #tpu.memory_space<vmem>>, %arg5: memref<256x32xbf16, #tpu.memory_space<vmem>>) attributes {dimension_semantics = [#tpu.dimension_semantics<parallel>], iteration_bounds = array<i64: 1>, scalar_prefetch = 0 : i64, scratch_operands = 0 : i64, tpu.core_type = #tpu.core_type<tc>, window_params = [{transform_indices = @transform_0, window_bounds = array<i64: 256, 144>}, {pipeline_mode = #tpu.pipeline_mode<synchronous>, transform_indices = @transform_1, window_bounds = array<i64: 144, 32>}, {pipeline_mode = #tpu.pipeline_mode<synchronous>, transform_indices = @transform_2, window_bounds = array<i64: 1, 32>}, {pipeline_mode = #tpu.pipeline_mode<synchronous>, transform_indices = @transform_3, window_bounds = array<i64: 1, 32>}, {transform_indices = @transform_4, window_bounds = array<i64: 256, 32>}]} {
    %c0 = arith.constant 0 : index
    %c0_0 = arith.constant 0 : index
    %0 = vector.load %arg1[%c0, %c0_0] : memref<256x144xbf16, #tpu.memory_space<vmem>>, vector<256x144xbf16>
    %c0_1 = arith.constant 0 : index
    %c0_2 = arith.constant 0 : index
    %1 = vector.load %arg2[%c0_1, %c0_2] : memref<144x32xbf16, #tpu.memory_space<vmem>>, vector<144x32xbf16>
    %cst = arith.constant dense<0.000000e+00> : vector<256x32xf32>
    %2 = tpu.matmul %0, %1, %cst {dimension_numbers = #tpu.dot_dimension_numbers<[1], [0], [0], [1], [0, 0, 1, 1], [], []>} : vector<256x144xbf16>, vector<144x32xbf16>, vector<256x32xf32> -> vector<256x32xf32>
    %c0_3 = arith.constant 0 : index
    %c0_4 = arith.constant 0 : index
    %3 = vector.load %arg3[%c0_3, %c0_4] : memref<1x32xf32, #tpu.memory_space<vmem>>, vector<1x32xf32>
    %4 = vector.broadcast %3 : vector<1x32xf32> to vector<256x32xf32>
    %5 = arith.mulf %2, %4 : vector<256x32xf32>
    %c0_5 = arith.constant 0 : index
    %c0_6 = arith.constant 0 : index
    %6 = vector.load %arg4[%c0_5, %c0_6] : memref<1x32xf32, #tpu.memory_space<vmem>>, vector<1x32xf32>
    %7 = vector.broadcast %6 : vector<1x32xf32> to vector<256x32xf32>
    %8 = arith.addf %5, %7 : vector<256x32xf32>
    %cst_7 = arith.constant 0.000000e+00 : f32
    %9 = vector.broadcast %cst_7 : f32 to vector<256x32xf32>
    %10 = arith.cmpf ogt, %8, %9 : vector<256x32xf32>
    %11 = math.exp %8 : vector<256x32xf32>
    %cst_8 = arith.constant 1.000000e+00 : f32
    %12 = vector.broadcast %cst_8 : f32 to vector<256x32xf32>
    %13 = arith.subf %11, %12 : vector<256x32xf32>
    %cst_9 = arith.constant 1.11111116 : f32
    %14 = vector.broadcast %cst_9 : f32 to vector<256x32xf32>
    %15 = arith.mulf %14, %13 : vector<256x32xf32>
    %16 = arith.select %10, %8, %15 : vector<256x32xi1>, vector<256x32xf32>
    %17 = arith.truncf %16 : vector<256x32xf32> to vector<256x32xbf16>
    %c0_10 = arith.constant 0 : index
    %c0_11 = arith.constant 0 : index
    %18 = vector.load %arg5[%c0_10, %c0_11] : memref<256x32xbf16, #tpu.memory_space<vmem>>, vector<256x32xbf16>
    tpu.vector_store %arg5[%c0_10, %c0_11], %17 {strides = array<i32>} : memref<256x32xbf16, #tpu.memory_space<vmem>>, vector<256x32xbf16>,
    return
  }
  func.func @transform_0(%arg0: i32) -> (i32, i32) {
    %c0_i32 = arith.constant 0 : i32
    %c0_i32_0 = arith.constant 0 : i32
    return %arg0, %c0_i32 : i32, i32
  }
  func.func @transform_1(%arg0: i32) -> (i32, i32) {
    %c0_i32 = arith.constant 0 : i32
    %c0_i32_0 = arith.constant 0 : i32
    %c0_i32_1 = arith.constant 0 : i32
    return %c0_i32, %c0_i32_0 : i32, i32
  }
  func.func @transform_2(%arg0: i32) -> (i32, i32) {
    %c0_i32 = arith.constant 0 : i32
    %c0_i32_0 = arith.constant 0 : i32
    %c0_i32_1 = arith.constant 0 : i32
    return %c0_i32, %c0_i32_0 : i32, i32
  }
  func.func @transform_3(%arg0: i32) -> (i32, i32) {
    %c0_i32 = arith.constant 0 : i32
    %c0_i32_0 = arith.constant 0 : i32
    %c0_i32_1 = arith.constant 0 : i32
    return %c0_i32, %c0_i32_0 : i32, i32
  }
  func.func @transform_4(%arg0: i32) -> (i32, i32) {
    %c0_i32 = arith.constant 0 : i32
    %c0_i32_0 = arith.constant 0 : i32
    return %arg0, %c0_i32 : i32, i32
  }
}

</mosaic_0001>

<bundles_post_ra>
// kernel: _lambda_.1
= control target key start
LH: loop header
LB: loop body
LE: loop exit
PB: predicated region body
PF: predicated region fallthrough
CT: control target
= control target key end

     0   :  { %vm266_vm0 = vcmask 130048   ;;  %vm789_vm2 = vcmask 257024   ;;  %s1676_s1 = inlined_call_operand.vmem [shape: bf16[144,32], index: 1, kind: input, shape index: {}]   ;;  %s1677_s0 = inlined_call_operand.vmem [shape: bf16[256,144], index: 0, kind: input, shape index: {}]   ;;  %s1678_s2 = inlined_call_operand.vmem [shape: f32[1,32], index: 2, kind: input, shape index: {}]   ;;  %s1679_s3 = inlined_call_operand.vmem [shape: f32[1,32], index: 3, kind: input, shape index: {}]   ;;  %s1680_s4 = inlined_call_operand.vmem [shape: bf16[256,32], index: 4, kind: output, shape index: {}]  }
   0x1   :  { %v1077_v0 = vld [vmem:[%s1676_s1 + $0x38] sm:$0xff]  ;;  %v1078_v1 = vld [vmem:[%s1676_s1 + $0x40] sm:$0xff]  ;;  %v830_v3 = vld [vmem:[%s1677_s0 + $0x8] sm:$0xf0] }
   0x2   :  { %v1038_v2 = vld [vmem:[%s1677_s0 + $0x4] sm:$0xf]  ;;  %315 = vmatpush.bf16.msra.mxu0 %v1077_v0  ;;  %1079 = vmatpush.bf16.msra.mxu2 %v1077_v0  ;;  %v1076_v5 = vld [vmem:[%s1676_s1 + $0x30] sm:$0xff]  ;;  %v1075_v6 = vld [vmem:[%s1676_s1 + $0x28] sm:$0xff] }
   0x3   :  { %v833_v4 = vor.u32 %v1038_v2, %v830_v3  ;;  %411 = vmatpush.bf16.msra.mxu1 %v1078_v1  ;;  %1087 = vmatpush.bf16.msra.mxu3 %v1078_v1  ;;  %v1056_v7 = vld [vmem:[%s1677_s0 + $0x94] sm:$0xf]  ;;  %v902_v8 = vld [vmem:[%s1677_s0 + $0x98] sm:$0xf0]  ;;  %v1074_v10 = vld [vmem:[%s1676_s1 + $0x20] sm:$0xff] }
   0x4   :  { %v905_v9 = vor.u32 %v1056_v7, %v902_v8  ;;  %v1073_v11 = vld [vmem:[%s1676_s1 + $0x18] sm:$0xff]  ;;  %v1040_v12 = vld [vmem:[%s1677_s0 + $0x14] sm:$0xf]  ;;  %v1071_v16 = vld [vmem:[%s1676_s1 + $0x8] sm:$0xff] }
   0x5   :  { %v838_v13 = vld [vmem:[%s1677_s0 + $0x18] sm:$0xf0]  ;;  %v1072_v15 = vld [vmem:[%s1676_s1 + $0x10] sm:$0xff]  ;;  %v1058_v17 = vld [vmem:[%s1677_s0 + $0xa4] sm:$0xf] }
   0x6   :  { %990 = vmatmul.msk.bf16.vlgmr.msra.gmra.mxu1 %vm266_vm0, %v833_v4  ;;  %316 = vmatpush.bf16.msra.mxu0 %v1076_v5  ;;  %v841_v14 = vor.u32 %v1040_v12, %v838_v13  ;;  %v910_v18 = vld [vmem:[%s1677_s0 + $0xa8] sm:$0xf0]  ;;  %v1070_v20 = vld [vmem:[%s1676_s1] sm:$0xff]  ;;  %v1039_v22 = vld [vmem:[%s1677_s0 + $0x4] sm:$0xf0] }
   0x7   :  { %1080 = vmatpush.bf16.msra.mxu2 %v1076_v5  ;;  %999 = vmatmul.msk.bf16.vlgmr.msra.gmra.mxu3 %vm266_vm0, %v905_v9  ;;  %v913_v19 = vor.u32 %v1058_v17, %v910_v18  ;;  %v828_v21 = vld [vmem:[%s1677_s0] sm:$0xf]  ;;  %v1055_v24 = vld [vmem:[%s1677_s0 + $0x84] sm:$0xf0]  ;;  %v1042_v27 = vld [vmem:[%s1677_s0 + $0x24] sm:$0xf] }
   0x8   :  { %v892_v23 = vld [vmem:[%s1677_s0 + $0x80] sm:$0xf]  ;;  %v829_v25 = vor.u32 %v1039_v22, %v828_v21  ;;  %v846_v28 = vld [vmem:[%s1677_s0 + $0x28] sm:$0xf0]  ;;  %v1060_v30 = vld [vmem:[%s1677_s0 + $0xb4] sm:$0xf] }
   0x9   :  { %v893_v26 = vor.u32 %v1055_v24, %v892_v23  ;;  %v849_v29 = vor.u32 %v1042_v27, %v846_v28  ;;  %v918_v31 = vld [vmem:[%s1677_s0 + $0xb8] sm:$0xf0]  ;;  %v836_v33 = vld [vmem:[%s1677_s0 + $0x10] sm:$0xf]  ;;  %v1041_v34 = vld [vmem:[%s1677_s0 + $0x14] sm:$0xf0] }
   0xa   :  { %317 = vmatpush.bf16.msra.mxu0 %v1075_v6  ;;  %v921_v32 = vor.u32 %v1060_v30, %v918_v31  ;;  %v900_v35 = vld [vmem:[%s1677_s0 + $0x90] sm:$0xf]  ;;  %v1057_v36 = vld [vmem:[%s1677_s0 + $0x94] sm:$0xf0]  ;;  %v837_v37 = vor.u32 %v1041_v34, %v836_v33  ;;  %v1044_v39 = vld [vmem:[%s1677_s0 + $0x34] sm:$0xf] }
   0xb   :  { %1081 = vmatpush.bf16.msra.mxu2 %v1075_v6  ;;  %v901_v38 = vor.u32 %v1057_v36, %v900_v35  ;;  %v854_v40 = vld [vmem:[%s1677_s0 + $0x38] sm:$0xf0]  ;;  %v1062_v42 = vld [vmem:[%s1677_s0 + $0xc4] sm:$0xf]  ;;  %v926_v43 = vld [vmem:[%s1677_s0 + $0xc8] sm:$0xf0] }
   0xc   :  { %v857_v41 = vor.u32 %v1044_v39, %v854_v40  ;;  %v929_v44 = vor.u32 %v1062_v42, %v926_v43  ;;  %v844_v45 = vld [vmem:[%s1677_s0 + $0x20] sm:$0xf]  ;;  %v1043_v46 = vld [vmem:[%s1677_s0 + $0x24] sm:$0xf0]  ;;  %v1046_v51 = vld [vmem:[%s1677_s0 + $0x44] sm:$0xf] }
   0xd   :  { %v908_v47 = vld [vmem:[%s1677_s0 + $0xa0] sm:$0xf]  ;;  %v1059_v48 = vld [vmem:[%s1677_s0 + $0xa4] sm:$0xf0]  ;;  %v845_v49 = vor.u32 %v1043_v46, %v844_v45  ;;  %v862_v52 = vld [vmem:[%s1677_s0 + $0x48] sm:$0xf0] }
   0xe   :  { %318 = vmatpush.bf16.msra.mxu0 %v1074_v10  ;;  %v909_v50 = vor.u32 %v1059_v48, %v908_v47  ;;  %v865_v53 = vor.u32 %v1046_v51, %v862_v52  ;;  %v1064_v54 = vld [vmem:[%s1677_s0 + $0xd4] sm:$0xf]  ;;  %v934_v55 = vld [vmem:[%s1677_s0 + $0xd8] sm:$0xf0]  ;;  %v852_v57 = vld [vmem:[%s1677_s0 + $0x30] sm:$0xf] }
   0xf   :  { %1082 = vmatpush.bf16.msra.mxu2 %v1074_v10  ;;  %v937_v56 = vor.u32 %v1064_v54, %v934_v55  ;;  %v1045_v58 = vld [vmem:[%s1677_s0 + $0x34] sm:$0xf0]  ;;  %v916_v59 = vld [vmem:[%s1677_s0 + $0xb0] sm:$0xf]  ;;  %v1048_v63 = vld [vmem:[%s1677_s0 + $0x54] sm:$0xf] }
  0x10   :  { %v1061_v60 = vld [vmem:[%s1677_s0 + $0xb4] sm:$0xf0]  ;;  %v853_v61 = vor.u32 %v1045_v58, %v852_v57  ;;  %v870_v0 = vld [vmem:[%s1677_s0 + $0x58] sm:$0xf0]  ;;  %v1066_v2 = vld [vmem:[%s1677_s0 + $0xe4] sm:$0xf] }
  0x11   :  { %v917_v62 = vor.u32 %v1061_v60, %v916_v59  ;;  %v873_v1 = vor.u32 %v1048_v63, %v870_v0  ;;  %v942_v3 = vld [vmem:[%s1677_s0 + $0xe8] sm:$0xf0]  ;;  %v860_v5 = vld [vmem:[%s1677_s0 + $0x40] sm:$0xf]  ;;  %v1047_v6 = vld [vmem:[%s1677_s0 + $0x44] sm:$0xf0] }
  0x12   :  { %319 = vmatpush.bf16.msra.mxu0 %v1073_v11  ;;  %v945_v4 = vor.u32 %v1066_v2, %v942_v3  ;;  %v924_v7 = vld [vmem:[%s1677_s0 + $0xc0] sm:$0xf]  ;;  %v1063_v8 = vld [vmem:[%s1677_s0 + $0xc4] sm:$0xf0]  ;;  %v861_v9 = vor.u32 %v1047_v6, %v860_v5  ;;  %v878_v12 = vld [vmem:[%s1677_s0 + $0x68] sm:$0xf0] }
  0x13   :  { %1083 = vmatpush.bf16.msra.mxu2 %v1073_v11  ;;  %v925_v10 = vor.u32 %v1063_v8, %v924_v7  ;;  %v1050_v11 = vld [vmem:[%s1677_s0 + $0x64] sm:$0xf]  ;;  %v868_v17 = vld [vmem:[%s1677_s0 + $0x50] sm:$0xf]  ;;  %v1049_v18 = vld [vmem:[%s1677_s0 + $0x54] sm:$0xf0] }
  0x14   :  { %v881_v13 = vor.u32 %v1050_v11, %v878_v12  ;;  %v869_v21 = vor.u32 %v1049_v18, %v868_v17  ;;  %v1052_v23 = vld [vmem:[%s1677_s0 + $0x74] sm:$0xf]  ;;  %v886_v24 = vld [vmem:[%s1677_s0 + $0x78] sm:$0xf0]  ;;  %v1051_v27 = vld [vmem:[%s1677_s0 + $0x64] sm:$0xf0] }
  0x15   :  { %v940_v28 = vld [vmem:[%s1677_s0 + $0xe0] sm:$0xf]  ;;  %v894_v33 = vld [vmem:[%s1677_s0 + $0x88] sm:$0xf0]  ;;  %v884_v36 = vld [vmem:[%s1677_s0 + $0x70] sm:$0xf] }
  0x16   :  { %991 = vmatmul.msk.bf16.gmra.mxu1 %vm266_vm0, %v841_v14  ;;  %320 = vmatpush.bf16.msra.mxu0 %v1072_v15  ;;  %v1068_v14 = vld [vmem:[%s1677_s0 + $0xf4] sm:$0xf]  ;;  %v948_v39 = vld [vmem:[%s1677_s0 + $0xf0] sm:$0xf]  ;;  %v1069_v40 = vld [vmem:[%s1677_s0 + $0xf4] sm:$0xf0] }
  0x17   :  { %1084 = vmatpush.bf16.msra.mxu2 %v1072_v15  ;;  %1000 = vmatmul.msk.bf16.gmra.mxu3 %vm266_vm0, %v913_v19  ;;  %v950_v15 = vld [vmem:[%s1677_s0 + $0xf8] sm:$0xf0]  ;;  %v932_v19 = vld [vmem:[%s1677_s0 + $0xd0] sm:$0xf]  ;;  %v949_v42 = vor.u32 %v1069_v40, %v948_v39  ;;  %v1417_v46 = vld [vmem:[%s1678_s2] ss:$0 sm:$0xff] }
  0x1a   :  { %321 = vmatpush.bf16.msra.mxu0 %v1071_v16 }
  0x1b   :  { %1085 = vmatpush.bf16.msra.mxu2 %v1071_v16  ;;  %v953_v16 = vor.u32 %v1068_v14, %v950_v15 }
  0x1e   :  { %322 = vmatpush.bf16.msra.mxu0 %v1070_v20 }
  0x1f   :  { %1086 = vmatpush.bf16.msra.mxu2 %v1070_v20  ;;  %v1065_v20 = vld [vmem:[%s1677_s0 + $0xd4] sm:$0xf0] }
  0x20   :  { %v933_v22 = vor.u32 %v1065_v20, %v932_v19 }
  0x21   :  { %323 = vmatmul.bf16.vlgmr.msra.gmra.mxu0 %v829_v25  ;;  %v889_v25 = vor.u32 %v1052_v23, %v886_v24 }
  0x22   :  { %363 = vmatmul.bf16.vlgmr.msra.gmra.mxu2 %v893_v26  ;;  %v876_v26 = vld [vmem:[%s1677_s0 + $0x60] sm:$0xf] }
  0x23   :  { %v877_v30 = vor.u32 %v1051_v27, %v876_v26 }
  0x26   :  { %992 = vmatmul.msk.bf16.gmra.mxu1 %vm266_vm0, %v849_v29  ;;  %v1067_v29 = vld [vmem:[%s1677_s0 + $0xe4] sm:$0xf0] }
  0x27   :  { %1001 = vmatmul.msk.bf16.gmra.mxu3 %vm266_vm0, %v921_v32  ;;  %v941_v31 = vor.u32 %v1067_v29, %v940_v28  ;;  %v1054_v32 = vld [vmem:[%s1677_s0 + $0x84] sm:$0xf] }
  0x28   :  { %v897_v34 = vor.u32 %v1054_v32, %v894_v33 }
  0x31   :  { %328 = vmatmul.bf16.gmra.mxu0 %v837_v37  ;;  %v1053_v37 = vld [vmem:[%s1677_s0 + $0x74] sm:$0xf0] }
  0x32   :  { %368 = vmatmul.bf16.gmra.mxu2 %v901_v38 }
  0x36   :  { %993 = vmatmul.msk.bf16.gmra.mxu1 %vm266_vm0, %v857_v41  ;;  %v885_v41 = vor.u32 %v1053_v37, %v884_v36 }
  0x37   :  { %1002 = vmatmul.msk.bf16.gmra.mxu3 %vm266_vm0, %v929_v44 }
  0x41   :  { %333 = vmatmul.bf16.gmra.mxu0 %v845_v49  ;;  %v1422_v49 = vld [vmem:[%s1679_s3] ss:$0 sm:$0xff] }
  0x42   :  { %373 = vmatmul.bf16.gmra.mxu2 %v909_v50 }
  0x46   :  { %994 = vmatmul.msk.bf16.gmra.mxu1 %vm266_vm0, %v865_v53 }
  0x47   :  { %1003 = vmatmul.msk.bf16.gmra.mxu3 %vm266_vm0, %v937_v56 }
  0x51   :  { %338 = vmatmul.bf16.gmra.mxu0 %v853_v61 }
  0x52   :  { %378 = vmatmul.bf16.gmra.mxu2 %v917_v62 }
  0x56   :  { %995 = vmatmul.msk.bf16.gmra.mxu1 %vm266_vm0, %v873_v1 }
  0x57   :  { %1004 = vmatmul.msk.bf16.gmra.mxu3 %vm266_vm0, %v945_v4 }
  0x61   :  { %343 = vmatmul.bf16.gmra.mxu0 %v861_v9 }
  0x62   :  { %383 = vmatmul.bf16.gmra.mxu2 %v925_v10 }
  0x66   :  { %996 = vmatmul.msk.bf16.gmra.mxu1 %vm266_vm0, %v881_v13 }
  0x67   :  { %1005 = vmatmul.msk.bf16.gmra.mxu3 %vm266_vm0, %v953_v16 }
  0x71   :  { %348 = vmatmul.bf16.gmra.mxu0 %v869_v21 }
  0x72   :  { %388 = vmatmul.bf16.gmra.mxu2 %v933_v22 }
  0x76   :  { %997 = vmatmul.msk.bf16.gmra.mxu1 %vm266_vm0, %v889_v25 }
  0x81   :  { %353 = vmatmul.bf16.gmra.mxu0 %v877_v30 }
  0x82   :  { %393 = vmatmul.bf16.gmra.mxu2 %v941_v31 }
  0x83   :  { %v413_v35 = vpop.f32.mrf.mxu1 }
  0x86   :  { %998 = vmatmul.msk.bf16.gmra.mxu1 %vm266_vm0, %v897_v34 }
  0x8a   :  { %v458_v45 = vpop.f32.mrf.mxu3 }
  0x8b   :  { %v415_v38 = vpop.f32.mrf.mxu1 }
  0x91   :  { %358 = vmatmul.bf16.gmra.mxu0 %v885_v41 }
  0x92   :  { %398 = vmatmul.bf16.gmra.mxu2 %v949_v42  ;;  %v460_v55 = vpop.f32.mrf.mxu3 }
  0x93   :  { %v418_v43 = vpop.f32.mrf.mxu1 }
  0x9a   :  { %v463_v3 = vpop.f32.mrf.mxu3 }
  0x9b   :  { %v420_v44 = vpop.f32.mrf.mxu1 }
  0x9e   :  { %v324_v47 = vpop.f32.mrf.mxu0 }
  0x9f   :  { %v414_v48 = vadd.f32 %v413_v35, %v324_v47 }
  0xa1   :  { %v497_v50 = vmul.f32 %v1417_v46, %v414_v48 }
  0xa2   :  { %v1444_v20 = vpop.f32.mrf.mxu3 }
  0xa3   :  { %v533_v51 = vadd.f32 %v1422_v49, %v497_v50  ;;  %v423_v52 = vpop.f32.mrf.mxu1 }
  0xa5   :  { %v597_v53 = vmul.f32 1.442695, %v533_v51  ;;  %v1426_v54 = vpop.f32.mrf.mxu2  ;;  %vm565_vm1 = vcmp.gt.f32.partialorder %v533_v51, 0.0 }
  0xa6   :  { %v326_v56 = vpop.f32.mrf.mxu0 }
  0xa7   :  { %1090 = vpow2.f32 %v597_v53  ;;  %v416_v57 = vadd.f32 %v415_v38, %v326_v56 }
  0xa9   :  { %v498_v58 = vmul.f32 %v1417_v46, %v416_v57 }
  0xaa   :  { %v1460_v42 = vpop.f32.mrf.mxu3 }
  0xab   :  { %v534_v59 = vadd.f32 %v1422_v49, %v498_v58  ;;  %v1430_v60 = vpop.f32.mrf.mxu1 }
  0xad   :  { %v1091_v61 = vpop.eup %1090  ;;  %v599_v62 = vmul.f32 1.442695, %v534_v59  ;;  %v1432_v63 = vpop.f32.mrf.mxu2  ;;  %vm566_vm3 = vcmp.gt.f32.partialorder %v534_v59, 0.0 }
  0xae   :  { %v1006_v0 = vadd.f32 -1.0, %v1091_v61  ;;  %v329_v1 = vpop.f32.mrf.mxu0 }
  0xaf   :  { %1092 = vpow2.f32 %v599_v62  ;;  %v419_v2 = vadd.f32 %v418_v43, %v329_v1 }
  0xb0   :  { %v693_v4 = vmul.f32 1.1111112, %v1006_v0 }
  0xb1   :  { %v499_v5 = vmul.f32 %v1417_v46, %v419_v2 }
  0xb2   :  { %v725_v6 = vsel %vm565_vm1, %v533_v51, %v693_v4 }
  0xb3   :  { %v757_v7 = vpack.c.bf16 %v725_v6, %v725_v6  ;;  %v535_v8 = vadd.f32 %v1422_v49, %v499_v5  ;;  %v1436_v9 = vpop.f32.mrf.mxu1 }
  0xb5   :  { %v1093_v10 = vpop.eup %1092  ;;  %790 = vst.msk [vmem:[%s1680_s4] sm:$0xf] %vm789_vm2, %v757_v7  ;;  %v601_v11 = vmul.f32 1.442695, %v535_v8  ;;  %v369_v12 = vpop.f32.mrf.mxu2  ;;  %vm567_vm4 = vcmp.gt.f32.partialorder %v535_v8, 0.0 }
  0xb6   :  { %v1007_v13 = vadd.f32 -1.0, %v1093_v10  ;;  %v459_v14 = vadd.f32 %v458_v45, %v369_v12  ;;  %v331_v15 = vpop.f32.mrf.mxu0 }
  0xb7   :  { %1094 = vpow2.f32 %v601_v11  ;;  %v421_v16 = vadd.f32 %v420_v44, %v331_v15  ;;  %v470_v11 = vpop.f32.mrf.mxu3 }
  0xb8   :  { %v694_v17 = vmul.f32 1.1111112, %v1007_v13  ;;  %v515_v18 = vmul.f32 %v1417_v46, %v459_v14 }
  0xb9   :  { %v500_v19 = vmul.f32 %v1417_v46, %v421_v16 }
  0xba   :  { %v726_v21 = vsel %vm566_vm3, %v534_v59, %v694_v17  ;;  %v551_v22 = vadd.f32 %v1422_v49, %v515_v18 }
  0xbb   :  { %v758_v23 = vpack.c.bf16 %v726_v21, %v726_v21  ;;  %v536_v24 = vadd.f32 %v1422_v49, %v500_v19  ;;  %v1448_v25 = vpop.f32.mrf.mxu1 }
  0xbc   :  { %v633_v26 = vmul.f32 1.442695, %v551_v22  ;;  %vm583_vm5 = vcmp.gt.f32.partialorder %v551_v22, 0.0 }
  0xbd   :  { %v1095_v27 = vpop.eup %1094  ;;  %791 = vst.msk [vmem:[%s1680_s4 + $0x4] sm:$0xf] %vm789_vm2, %v758_v23  ;;  %v603_v28 = vmul.f32 1.442695, %v536_v24  ;;  %v371_v29 = vpop.f32.mrf.mxu2  ;;  %vm568_vm6 = vcmp.gt.f32.partialorder %v536_v24, 0.0 }
  0xbe   :  { %v1008_v30 = vadd.f32 -1.0, %v1095_v27  ;;  %1096 = vpow2.f32 %v633_v26  ;;  %v461_v31 = vadd.f32 %v460_v55, %v371_v29  ;;  %v334_v32 = vpop.f32.mrf.mxu0 }
  0xbf   :  { %1098 = vpow2.f32 %v603_v28  ;;  %v424_v33 = vadd.f32 %v423_v52, %v334_v32 }
  0xc0   :  { %v695_v34 = vmul.f32 1.1111112, %v1008_v30  ;;  %v516_v35 = vmul.f32 %v1417_v46, %v461_v31 }
  0xc1   :  { %v501_v36 = vmul.f32 %v1417_v46, %v424_v33 }
  0xc2   :  { %v727_v37 = vsel %vm567_vm4, %v535_v8, %v695_v34  ;;  %v552_v38 = vadd.f32 %v1422_v49, %v516_v35 }
  0xc3   :  { %v759_v39 = vpack.c.bf16 %v727_v37, %v727_v37  ;;  %v537_v40 = vadd.f32 %v1422_v49, %v501_v36  ;;  %v1458_v41 = vpop.f32.mrf.mxu1 }
  0xc4   :  { %v1097_v43 = vpop.eup %1096  ;;  %v635_v44 = vmul.f32 1.442695, %v552_v38  ;;  %vm584_vm7 = vcmp.gt.f32.partialorder %v552_v38, 0.0 }
  0xc5   :  { %v1099_v45 = vpop.eup %1098  ;;  %792 = vst.msk [vmem:[%s1680_s4 + $0x8] sm:$0xf] %vm789_vm2, %v759_v39  ;;  %v1024_v47 = vadd.f32 -1.0, %v1097_v43  ;;  %v605_v48 = vmul.f32 1.442695, %v537_v40  ;;  %v374_v50 = vpop.f32.mrf.mxu2  ;;  %vm569_vm8 = vcmp.gt.f32.partialorder %v537_v40, 0.0 }
  0xc6   :  { %v1009_v51 = vadd.f32 -1.0, %v1099_v45  ;;  %1100 = vpow2.f32 %v635_v44  ;;  %v464_v52 = vadd.f32 %v463_v3, %v374_v50  ;;  %v336_v53 = vpop.f32.mrf.mxu0 }
  0xc7   :  { %v711_v55 = vmul.f32 1.1111112, %v1024_v47  ;;  %1102 = vpow2.f32 %v605_v48  ;;  %v426_v56 = vadd.f32 %v1430_v60, %v336_v53 }
  0xc8   :  { %v696_v57 = vmul.f32 1.1111112, %v1009_v51  ;;  %v517_v58 = vmul.f32 %v1417_v46, %v464_v52 }
  0xc9   :  { %v743_v59 = vsel %vm583_vm5, %v551_v22, %v711_v55  ;;  %v502_v61 = vmul.f32 %v1417_v46, %v426_v56 }
  0xca   :  { %v775_v62 = vpack.c.bf16 %v743_v59, %v743_v59  ;;  %v728_v0 = vsel %vm568_vm6, %v536_v24, %v696_v57  ;;  %v553_v1 = vadd.f32 %v1422_v49, %v517_v58 }
  0xcb   :  { %v760_v2 = vpack.c.bf16 %v728_v0, %v728_v0  ;;  %v538_v3 = vadd.f32 %v1422_v49, %v502_v61  ;;  %v1471_v4 = vpop.f32.mrf.mxu1 }
  0xcc   :  { %v1101_v5 = vpop.eup %1100  ;;  %808 = vst.msk [vmem:[%s1680_s4 + $0x48] sm:$0xf] %vm789_vm2, %v775_v62  ;;  %v637_v60 = vmul.f32 1.442695, %v553_v1  ;;  %vm585_vm9 = vcmp.gt.f32.partialorder %v553_v1, 0.0 }
  0xcd   :  { %v1103_v6 = vpop.eup %1102  ;;  %793 = vst.msk [vmem:[%s1680_s4 + $0xc] sm:$0xf] %vm789_vm2, %v760_v2  ;;  %v1025_v7 = vadd.f32 -1.0, %v1101_v5  ;;  %v607_v8 = vmul.f32 1.442695, %v538_v3  ;;  %v376_v10 = vpop.f32.mrf.mxu2  ;;  %vm570_vm10 = vcmp.gt.f32.partialorder %v538_v3, 0.0 }
  0xce   :  { %v1010_v12 = vadd.f32 -1.0, %v1103_v6  ;;  %1104 = vpow2.f32 %v637_v60  ;;  %v466_v13 = vadd.f32 %v1444_v20, %v376_v10  ;;  %v339_v14 = vpop.f32.mrf.mxu0 }
  0xcf   :  { %v712_v15 = vmul.f32 1.1111112, %v1025_v7  ;;  %1106 = vpow2.f32 %v607_v8  ;;  %v429_v16 = vadd.f32 %v1436_v9, %v339_v14 }
  0xd0   :  { %v697_v17 = vmul.f32 1.1111112, %v1010_v12  ;;  %v518_v18 = vmul.f32 %v1417_v46, %v466_v13 }
  0xd1   :  { %v744_v19 = vsel %vm584_vm7, %v552_v38, %v712_v15  ;;  %v503_v21 = vmul.f32 %v1417_v46, %v429_v16  ;;  %v473_v38 = vpop.f32.mrf.mxu3 }
  0xd2   :  { %v776_v22 = vpack.c.bf16 %v744_v19, %v744_v19  ;;  %v729_v23 = vsel %vm569_vm8, %v537_v40, %v697_v17  ;;  %v554_v24 = vadd.f32 %v1422_v49, %v518_v18 }
  0xd3   :  { %v761_v26 = vpack.c.bf16 %v729_v23, %v729_v23  ;;  %v539_v20 = vadd.f32 %v1422_v49, %v503_v21  ;;  %v1487_v27 = vpop.f32.mrf.mxu1 }
  0xd4   :  { %v1105_v28 = vpop.eup %1104  ;;  %809 = vst.msk [vmem:[%s1680_s4 + $0x4c] sm:$0xf] %vm789_vm2, %v776_v22  ;;  %v639_v9 = vmul.f32 1.442695, %v554_v24  ;;  %vm586_vm11 = vcmp.gt.f32.partialorder %v554_v24, 0.0 }
  0xd5   :  { %v1107_v29 = vpop.eup %1106  ;;  %794 = vst.msk [vmem:[%s1680_s4 + $0x10] sm:$0xf] %vm789_vm2, %v761_v26  ;;  %v1026_v30 = vadd.f32 -1.0, %v1105_v28  ;;  %v609_v31 = vmul.f32 1.442695, %v539_v20  ;;  %v379_v32 = vpop.f32.mrf.mxu2  ;;  %vm571_vm12 = vcmp.gt.f32.partialorder %v539_v20, 0.0 }
  0xd6   :  { %v1011_v33 = vadd.f32 -1.0, %v1107_v29  ;;  %1108 = vpow2.f32 %v639_v9  ;;  %v469_v34 = vadd.f32 %v1460_v42, %v379_v32  ;;  %v341_v35 = vpop.f32.mrf.mxu0 }
  0xd7   :  { %v713_v36 = vmul.f32 1.1111112, %v1026_v30  ;;  %1110 = vpow2.f32 %v609_v31  ;;  %v431_v37 = vadd.f32 %v1448_v25, %v341_v35 }
  0xd8   :  { %v698_v39 = vmul.f32 1.1111112, %v1011_v33  ;;  %v519_v40 = vmul.f32 %v1417_v46, %v469_v34 }
  0xd9   :  { %v745_v43 = vsel %vm585_vm9, %v553_v1, %v713_v36  ;;  %v504_v44 = vmul.f32 %v1417_v46, %v431_v37  ;;  %v475_v60 = vpop.f32.mrf.mxu3 }
  0xda   :  { %v777_v45 = vpack.c.bf16 %v745_v43, %v745_v43  ;;  %v730_v47 = vsel %vm570_vm10, %v538_v3, %v698_v39  ;;  %v555_v48 = vadd.f32 %v1422_v49, %v519_v40 }
  0xdb   :  { %v762_v50 = vpack.c.bf16 %v730_v47, %v730_v47  ;;  %v540_v42 = vadd.f32 %v1422_v49, %v504_v44  ;;  %v1503_v51 = vpop.f32.mrf.mxu1 }
  0xdc   :  { %v1109_v52 = vpop.eup %1108  ;;  %810 = vst.msk [vmem:[%s1680_s4 + $0x50] sm:$0xf] %vm789_vm2, %v777_v45  ;;  %v641_v25 = vmul.f32 1.442695, %v555_v48  ;;  %vm587_vm13 = vcmp.gt.f32.partialorder %v555_v48, 0.0 }
  0xdd   :  { %v1111_v53 = vpop.eup %1110  ;;  %795 = vst.msk [vmem:[%s1680_s4 + $0x14] sm:$0xf] %vm789_vm2, %v762_v50  ;;  %v1027_v55 = vadd.f32 -1.0, %v1109_v52  ;;  %v611_v56 = vmul.f32 1.442695, %v540_v42  ;;  %v381_v57 = vpop.f32.mrf.mxu2  ;;  %vm572_vm14 = vcmp.gt.f32.partialorder %v540_v42, 0.0 }
  0xde   :  { %v1012_v58 = vadd.f32 -1.0, %v1111_v53  ;;  %1112 = vpow2.f32 %v641_v25  ;;  %v471_v59 = vadd.f32 %v470_v11, %v381_v57  ;;  %v344_v61 = vpop.f32.mrf.mxu0 }
  0xdf   :  { %v714_v62 = vmul.f32 1.1111112, %v1027_v55  ;;  %1114 = vpow2.f32 %v611_v56  ;;  %v434_v0 = vadd.f32 %v1458_v41, %v344_v61 }
  0xe0   :  { %v699_v1 = vmul.f32 1.1111112, %v1012_v58  ;;  %v520_v2 = vmul.f32 %v1417_v46, %v471_v59 }
  0xe1   :  { %v746_v3 = vsel %vm586_vm11, %v554_v24, %v714_v62  ;;  %v505_v5 = vmul.f32 %v1417_v46, %v434_v0  ;;  %v478_v34 = vpop.f32.mrf.mxu3 }
  0xe2   :  { %v778_v6 = vpack.c.bf16 %v746_v3, %v746_v3  ;;  %v731_v7 = vsel %vm571_vm12, %v539_v20, %v699_v1  ;;  %v556_v8 = vadd.f32 %v1422_v49, %v520_v2 }
  0xe3   :  { %v763_v10 = vpack.c.bf16 %v731_v7, %v731_v7  ;;  %v541_v11 = vadd.f32 %v1422_v49, %v505_v5  ;;  %v1518_v12 = vpop.f32.mrf.mxu1 }
  0xe4   :  { %v1113_v13 = vpop.eup %1112  ;;  %811 = vst.msk [vmem:[%s1680_s4 + $0x54] sm:$0xf] %vm789_vm2, %v778_v6  ;;  %v643_v41 = vmul.f32 1.442695, %v556_v8  ;;  %vm588_vm15 = vcmp.gt.f32.partialorder %v556_v8, 0.0 }
  0xe5   :  { %v1115_v14 = vpop.eup %1114  ;;  %796 = vst.msk [vmem:[%s1680_s4 + $0x18] sm:$0xf] %vm789_vm2, %v763_v10  ;;  %v1028_v15 = vadd.f32 -1.0, %v1113_v13  ;;  %v613_v16 = vmul.f32 1.442695, %v541_v11  ;;  %v384_v17 = vpop.f32.mrf.mxu2  ;;  %vm573_vm0 = vcmp.gt.f32.partialorder %v541_v11, 0.0 }
  0xe6   :  { %v1013_v18 = vadd.f32 -1.0, %v1115_v14  ;;  %1116 = vpow2.f32 %v643_v41  ;;  %v474_v19 = vadd.f32 %v473_v38, %v384_v17  ;;  %v346_v21 = vpop.f32.mrf.mxu0 }
  0xe7   :  { %v715_v22 = vmul.f32 1.1111112, %v1028_v15  ;;  %1118 = vpow2.f32 %v613_v16  ;;  %v436_v23 = vadd.f32 %v1471_v4, %v346_v21 }
  0xe8   :  { %v700_v24 = vmul.f32 1.1111112, %v1013_v18  ;;  %v521_v26 = vmul.f32 %v1417_v46, %v474_v19 }
  0xe9   :  { %v747_v20 = vsel %vm587_vm13, %v555_v48, %v715_v22  ;;  %v506_v28 = vmul.f32 %v1417_v46, %v436_v23  ;;  %v480_v2 = vpop.f32.mrf.mxu3 }
  0xea   :  { %v779_v9 = vpack.c.bf16 %v747_v20, %v747_v20  ;;  %v732_v29 = vsel %vm572_vm14, %v540_v42, %v700_v24  ;;  %v557_v30 = vadd.f32 %v1422_v49, %v521_v26 }
  0xeb   :  { %v764_v31 = vpack.c.bf16 %v732_v29, %v732_v29  ;;  %v542_v32 = vadd.f32 %v1422_v49, %v506_v28  ;;  %v1533_v33 = vpop.f32.mrf.mxu1 }
  0xec   :  { %v1117_v35 = vpop.eup %1116  ;;  %812 = vst.msk [vmem:[%s1680_s4 + $0x58] sm:$0xf] %vm789_vm2, %v779_v9  ;;  %v645_v4 = vmul.f32 1.442695, %v557_v30  ;;  %vm589_vm1 = vcmp.gt.f32.partialorder %v557_v30, 0.0 }
  0xed   :  { %v1119_v36 = vpop.eup %1118  ;;  %797 = vst.msk [vmem:[%s1680_s4 + $0x1c] sm:$0xf] %vm789_vm2, %v764_v31  ;;  %v1029_v37 = vadd.f32 -1.0, %v1117_v35  ;;  %v615_v38 = vmul.f32 1.442695, %v542_v32  ;;  %v386_v39 = vpop.f32.mrf.mxu2  ;;  %vm574_vm3 = vcmp.gt.f32.partialorder %v542_v32, 0.0 }
  0xee   :  { %v1014_v40 = vadd.f32 -1.0, %v1119_v36  ;;  %1120 = vpow2.f32 %v645_v4  ;;  %v476_v43 = vadd.f32 %v475_v60, %v386_v39  ;;  %v349_v44 = vpop.f32.mrf.mxu0 }
  0xef   :  { %v716_v45 = vmul.f32 1.1111112, %v1029_v37  ;;  %1122 = vpow2.f32 %v615_v38  ;;  %v439_v47 = vadd.f32 %v1487_v27, %v349_v44 }
  0xf0   :  { %v701_v48 = vmul.f32 1.1111112, %v1014_v40  ;;  %v522_v50 = vmul.f32 %v1417_v46, %v476_v43 }
  0xf1   :  { %v748_v42 = vsel %vm588_vm15, %v556_v8, %v716_v45  ;;  %v507_v52 = vmul.f32 %v1417_v46, %v439_v47  ;;  %v483_v29 = vpop.f32.mrf.mxu3 }
  0xf2   :  { %v780_v25 = vpack.c.bf16 %v748_v42, %v748_v42  ;;  %v733_v53 = vsel %vm573_vm0, %v541_v11, %v701_v48  ;;  %v558_v55 = vadd.f32 %v1422_v49, %v522_v50 }
  0xf3   :  { %v765_v56 = vpack.c.bf16 %v733_v53, %v733_v53  ;;  %v543_v57 = vadd.f32 %v1422_v49, %v507_v52  ;;  %v1548_v58 = vpop.f32.mrf.mxu1 }
  0xf4   :  { %v1121_v59 = vpop.eup %1120  ;;  %813 = vst.msk [vmem:[%s1680_s4 + $0x5c] sm:$0xf] %vm789_vm2, %v780_v25  ;;  %v647_v27 = vmul.f32 1.442695, %v558_v55  ;;  %vm590_vm4 = vcmp.gt.f32.partialorder %v558_v55, 0.0 }
  0xf5   :  { %v1123_v61 = vpop.eup %1122  ;;  %798 = vst.msk [vmem:[%s1680_s4 + $0x20] sm:$0xf] %vm789_vm2, %v765_v56  ;;  %v1030_v62 = vadd.f32 -1.0, %v1121_v59  ;;  %v617_v0 = vmul.f32 1.442695, %v543_v57  ;;  %v389_v1 = vpop.f32.mrf.mxu2  ;;  %vm575_vm5 = vcmp.gt.f32.partialorder %v543_v57, 0.0 }
  0xf6   :  { %v1015_v3 = vadd.f32 -1.0, %v1123_v61  ;;  %1124 = vpow2.f32 %v647_v27  ;;  %v479_v5 = vadd.f32 %v478_v34, %v389_v1  ;;  %v351_v60 = vpop.f32.mrf.mxu0 }
  0xf7   :  { %v717_v6 = vmul.f32 1.1111112, %v1030_v62  ;;  %1126 = vpow2.f32 %v617_v0  ;;  %v441_v7 = vadd.f32 %v1503_v51, %v351_v60 }
  0xf8   :  { %v702_v8 = vmul.f32 1.1111112, %v1015_v3  ;;  %v523_v10 = vmul.f32 %v1417_v46, %v479_v5 }
  0xf9   :  { %v749_v11 = vsel %vm589_vm1, %v557_v30, %v717_v6  ;;  %v508_v13 = vmul.f32 %v1417_v46, %v441_v7  ;;  %v485_v61 = vpop.f32.mrf.mxu3 }
  0xfa   :  { %v781_v41 = vpack.c.bf16 %v749_v11, %v749_v11  ;;  %v734_v14 = vsel %vm574_vm3, %v542_v32, %v702_v8  ;;  %v559_v15 = vadd.f32 %v1422_v49, %v523_v10 }
  0xfb   :  { %v766_v16 = vpack.c.bf16 %v734_v14, %v734_v14  ;;  %v544_v17 = vadd.f32 %v1422_v49, %v508_v13  ;;  %v1563_v18 = vpop.f32.mrf.mxu1 }
  0xfc   :  { %v1125_v19 = vpop.eup %1124  ;;  %814 = vst.msk [vmem:[%s1680_s4 + $0x60] sm:$0xf] %vm789_vm2, %v781_v41  ;;  %v649_v51 = vmul.f32 1.442695, %v559_v15  ;;  %vm591_vm6 = vcmp.gt.f32.partialorder %v559_v15, 0.0 }
  0xfd   :  { %v1127_v21 = vpop.eup %1126  ;;  %799 = vst.msk [vmem:[%s1680_s4 + $0x24] sm:$0xf] %vm789_vm2, %v766_v16  ;;  %v1031_v22 = vadd.f32 -1.0, %v1125_v19  ;;  %v619_v23 = vmul.f32 1.442695, %v544_v17  ;;  %v391_v24 = vpop.f32.mrf.mxu2  ;;  %vm576_vm7 = vcmp.gt.f32.partialorder %v544_v17, 0.0 }
  0xfe   :  { %v1016_v26 = vadd.f32 -1.0, %v1127_v21  ;;  %1128 = vpow2.f32 %v649_v51  ;;  %v481_v20 = vadd.f32 %v480_v2, %v391_v24  ;;  %v354_v28 = vpop.f32.mrf.mxu0 }
  0xff   :  { %v718_v9 = vmul.f32 1.1111112, %v1031_v22  ;;  %1130 = vpow2.f32 %v619_v23  ;;  %v444_v30 = vadd.f32 %v1518_v12, %v354_v28 }
 0x100   :  { %v703_v31 = vmul.f32 1.1111112, %v1016_v26  ;;  %v524_v32 = vmul.f32 %v1417_v46, %v481_v20 }
 0x101   :  { %v750_v34 = vsel %vm590_vm4, %v558_v55, %v718_v9  ;;  %v509_v35 = vmul.f32 %v1417_v46, %v444_v30 }
 0x102   :  { %v782_v4 = vpack.c.bf16 %v750_v34, %v750_v34  ;;  %v735_v36 = vsel %vm575_vm5, %v543_v57, %v703_v31  ;;  %v560_v37 = vadd.f32 %v1422_v49, %v524_v32 }
 0x103   :  { %v767_v38 = vpack.c.bf16 %v735_v36, %v735_v36  ;;  %v545_v39 = vadd.f32 %v1422_v49, %v509_v35  ;;  %v453_v40 = vpop.f32.mrf.mxu1 }
 0x104   :  { %v1129_v43 = vpop.eup %1128  ;;  %815 = vst.msk [vmem:[%s1680_s4 + $0x64] sm:$0xf] %vm789_vm2, %v782_v4  ;;  %v651_v12 = vmul.f32 1.442695, %v560_v37  ;;  %v454_v44 = vadd.f32 %v453_v40, %v1426_v54  ;;  %vm592_vm8 = vcmp.gt.f32.partialorder %v560_v37, 0.0 }
 0x105   :  { %v1131_v45 = vpop.eup %1130  ;;  %800 = vst.msk [vmem:[%s1680_s4 + $0x28] sm:$0xf] %vm789_vm2, %v767_v38  ;;  %v1032_v47 = vadd.f32 -1.0, %v1129_v43  ;;  %v621_v48 = vmul.f32 1.442695, %v545_v39  ;;  %v394_v50 = vpop.f32.mrf.mxu2  ;;  %vm577_vm9 = vcmp.gt.f32.partialorder %v545_v39, 0.0 }
 0x106   :  { %v1017_v42 = vadd.f32 -1.0, %v1131_v45  ;;  %1132 = vpow2.f32 %v651_v12  ;;  %v513_v52 = vmul.f32 %v1417_v46, %v454_v44  ;;  %v484_v25 = vadd.f32 %v483_v29, %v394_v50  ;;  %v356_v53 = vpop.f32.mrf.mxu0 }
 0x107   :  { %v719_v55 = vmul.f32 1.1111112, %v1032_v47  ;;  %1134 = vpow2.f32 %v621_v48  ;;  %v446_v56 = vadd.f32 %v1533_v33, %v356_v53 }
 0x108   :  { %v704_v54 = vmul.f32 1.1111112, %v1017_v42  ;;  %v549_v57 = vadd.f32 %v1422_v49, %v513_v52  ;;  %v525_v59 = vmul.f32 %v1417_v46, %v484_v25 }
 0x109   :  { %v751_v27 = vsel %vm591_vm6, %v559_v15, %v719_v55  ;;  %v510_v62 = vmul.f32 %v1417_v46, %v446_v56 }
 0x10a   :  { %v783_v0 = vpack.c.bf16 %v751_v27, %v751_v27  ;;  %v736_v1 = vsel %vm576_vm7, %v544_v17, %v704_v54  ;;  %v629_v2 = vmul.f32 1.442695, %v549_v57  ;;  %v1593_v5 = vadd.f32 %v1422_v49, %v525_v59 }
 0x10b   :  { %v768_v3 = vpack.c.bf16 %v736_v1, %v736_v1  ;;  %v1596_v33 = vadd.f32 %v1422_v49, %v510_v62  ;;  %v455_v60 = vpop.f32.mrf.mxu1  ;;  %vm581_vm10 = vcmp.gt.f32.partialorder %v549_v57, 0.0 }
 0x10c   :  { %v1133_v6 = vpop.eup %1132  ;;  %816 = vst.msk [vmem:[%s1680_s4 + $0x68] sm:$0xf] %vm789_vm2, %v783_v0  ;;  %1136 = vpow2.f32 %v629_v2  ;;  %v456_v7 = vadd.f32 %v455_v60, %v1432_v63  ;;  %v653_v11 = vmul.f32 1.442695, %v1593_v5  ;;  %vm593_vm11 = vcmp.gt.f32.partialorder %v1593_v5, 0.0 }
 0x10d   :  { %v1135_v8 = vpop.eup %1134  ;;  %801 = vst.msk [vmem:[%s1680_s4 + $0x2c] sm:$0xf] %vm789_vm2, %v768_v3  ;;  %v1033_v10 = vadd.f32 -1.0, %v1133_v6  ;;  %v396_v13 = vpop.f32.mrf.mxu2  ;;  %v623_v14 = vmul.f32 1.442695, %v1596_v33  ;;  %vm578_vm12 = vcmp.gt.f32.partialorder %v1596_v33, 0.0 }
 0x10e   :  { %v1018_v41 = vadd.f32 -1.0, %v1135_v8  ;;  %v514_v15 = vmul.f32 %v1417_v46, %v456_v7  ;;  %v359_v16 = vpop.f32.mrf.mxu0  ;;  %1138 = vpow2.f32 %v653_v11  ;;  %v486_v19 = vadd.f32 %v485_v61, %v396_v13 }
 0x10f   :  { %v720_v17 = vmul.f32 1.1111112, %v1033_v10  ;;  %v449_v63 = vadd.f32 %v1548_v58, %v359_v16  ;;  %1140 = vpow2.f32 %v623_v14  ;;  %v488_v58 = vpop.f32.mrf.mxu3 }
 0x110   :  { %v705_v51 = vmul.f32 1.1111112, %v1018_v41  ;;  %v550_v21 = vadd.f32 %v1422_v49, %v514_v15  ;;  %v526_v23 = vmul.f32 %v1417_v46, %v486_v19 }
 0x111   :  { %v752_v22 = vsel %vm592_vm8, %v560_v37, %v720_v17  ;;  %v511_v24 = vmul.f32 %v1417_v46, %v449_v63 }
 0x112   :  { %v1137_v26 = vpop.eup %1136  ;;  %v784_v20 = vpack.c.bf16 %v752_v22, %v752_v22  ;;  %v737_v28 = vsel %vm577_vm9, %v545_v39, %v705_v51  ;;  %v631_v9 = vmul.f32 1.442695, %v550_v21  ;;  %v562_v31 = vadd.f32 %v1422_v49, %v526_v23 }
 0x113   :  { %v769_v29 = vpack.c.bf16 %v737_v28, %v737_v28  ;;  %v1022_v30 = vadd.f32 -1.0, %v1137_v26  ;;  %v1616_v32 = vadd.f32 %v1422_v49, %v511_v24  ;;  %vm582_vm13 = vcmp.gt.f32.partialorder %v550_v21, 0.0 }
 0x114   :  { %817 = vst.msk [vmem:[%s1680_s4 + $0x6c] sm:$0xf] %vm789_vm2, %v784_v20  ;;  %1142 = vpow2.f32 %v631_v9  ;;  %v1139_v34 = vpop.eup %1138  ;;  %v655_v38 = vmul.f32 1.442695, %v562_v31  ;;  %vm594_vm14 = vcmp.gt.f32.partialorder %v562_v31, 0.0 }
 0x115   :  { %802 = vst.msk [vmem:[%s1680_s4 + $0x30] sm:$0xf] %vm789_vm2, %v769_v29  ;;  %v709_v35 = vmul.f32 1.1111112, %v1022_v30  ;;  %v399_v4 = vpop.f32.mrf.mxu2  ;;  %v1141_v36 = vpop.eup %1140  ;;  %v1034_v37 = vadd.f32 -1.0, %v1139_v34  ;;  %vm579_vm15 = vcmp.gt.f32.partialorder %v1616_v32, 0.0 }
 0x116   :  { %v625_v39 = vmul.f32 1.442695, %v1616_v32  ;;  %v489_v40 = vadd.f32 %v488_v58, %v399_v4  ;;  %v361_v43 = vpop.f32.mrf.mxu0  ;;  %v1019_v44 = vadd.f32 -1.0, %v1141_v36  ;;  %1144 = vpow2.f32 %v655_v38 }
 0x117   :  { %v741_v12 = vsel %vm581_vm10, %v549_v57, %v709_v35  ;;  %v451_v45 = vadd.f32 %v1563_v18, %v361_v43  ;;  %v721_v48 = vmul.f32 1.1111112, %v1034_v37  ;;  %v490_v62 = vpop.f32.mrf.mxu3 }
 0x118   :  { %v773_v47 = vpack.c.bf16 %v741_v12, %v741_v12  ;;  %v527_v50 = vmul.f32 %v1417_v46, %v489_v40  ;;  %v706_v42 = vmul.f32 1.1111112, %v1019_v44  ;;  %1146 = vpow2.f32 %v625_v39 }
 0x119   :  { %v512_v52 = vmul.f32 %v1417_v46, %v451_v45  ;;  %v753_v53 = vsel %vm593_vm11, %v1593_v5, %v721_v48 }
 0x11a   :  { %v1143_v25 = vpop.eup %1142  ;;  %806 = vst.msk [vmem:[%s1680_s4 + $0x40] sm:$0xf] %vm789_vm2, %v773_v47  ;;  %v563_v18 = vadd.f32 %v1422_v49, %v527_v50  ;;  %v785_v55 = vpack.c.bf16 %v753_v53, %v753_v53  ;;  %v738_v56 = vsel %vm578_vm12, %v1596_v33, %v706_v42 }
 0x11b   :  { %v1023_v54 = vadd.f32 -1.0, %v1143_v25  ;;  %v548_v57 = vadd.f32 %v1422_v49, %v512_v52  ;;  %v770_v59 = vpack.c.bf16 %v738_v56, %v738_v56 }
 0x11c   :  { %v657_v27 = vmul.f32 1.442695, %v563_v18  ;;  %818 = vst.msk [vmem:[%s1680_s4 + $0x70] sm:$0xf] %vm789_vm2, %v785_v55  ;;  %v1145_v1 = vpop.eup %1144  ;;  %vm595_vm0 = vcmp.gt.f32.partialorder %v563_v18, 0.0 }
 0x11d   :  { %v710_v61 = vmul.f32 1.1111112, %v1023_v54  ;;  %v401_v0 = vpop.f32.mrf.mxu2  ;;  %803 = vst.msk [vmem:[%s1680_s4 + $0x34] sm:$0xf] %vm789_vm2, %v770_v59  ;;  %v627_v2 = vmul.f32 1.442695, %v548_v57 }
 0x11e   :  { %1148 = vpow2.f32 %v657_v27  ;;  %v491_v3 = vadd.f32 %v490_v62, %v401_v0  ;;  %v1147_v5 = vpop.eup %1146  ;;  %v1035_v60 = vadd.f32 -1.0, %v1145_v1  ;;  %vm580_vm1 = vcmp.gt.f32.partialorder %v548_v57, 0.0 }
 0x11f   :  { %v742_v33 = vsel %vm582_vm13, %v550_v21, %v710_v61  ;;  %v1020_v7 = vadd.f32 -1.0, %v1147_v5  ;;  %1150 = vpow2.f32 %v627_v2 }
 0x120   :  { %v774_v6 = vpack.c.bf16 %v742_v33, %v742_v33  ;;  %v528_v8 = vmul.f32 %v1417_v46, %v491_v3  ;;  %v722_v10 = vmul.f32 1.1111112, %v1035_v60 }
 0x121   :  { %v707_v11 = vmul.f32 1.1111112, %v1020_v7 }
 0x122   :  { %807 = vst.msk [vmem:[%s1680_s4 + $0x44] sm:$0xf] %vm789_vm2, %v774_v6  ;;  %v564_v13 = vadd.f32 %v1422_v49, %v528_v8  ;;  %v754_v41 = vsel %vm594_vm14, %v562_v31, %v722_v10 }
 0x123   :  { %v786_v15 = vpack.c.bf16 %v754_v41, %v754_v41  ;;  %v739_v16 = vsel %vm579_vm15, %v1616_v32, %v707_v11 }
 0x124   :  { %v1149_v14 = vpop.eup %1148  ;;  %v659_v17 = vmul.f32 1.442695, %v564_v13  ;;  %v771_v19 = vpack.c.bf16 %v739_v16, %v739_v16  ;;  %vm596_vm3 = vcmp.gt.f32.partialorder %v564_v13, 0.0 }
 0x125   :  { %v1036_v46 = vadd.f32 -1.0, %v1149_v14  ;;  %v1151_v63 = vpop.eup %1150  ;;  %819 = vst.msk [vmem:[%s1680_s4 + $0x74] sm:$0xf] %vm789_vm2, %v786_v15 }
 0x126   :  { %1152 = vpow2.f32 %v659_v17  ;;  %804 = vst.msk [vmem:[%s1680_s4 + $0x38] sm:$0xf] %vm789_vm2, %v771_v19  ;;  %v1021_v51 = vadd.f32 -1.0, %v1151_v63 }
 0x127   :  { %v723_v49 = vmul.f32 1.1111112, %v1036_v46 }
 0x128   :  { %v708_v22 = vmul.f32 1.1111112, %v1021_v51 }
 0x129   :  { %v755_v21 = vsel %vm595_vm0, %v563_v18, %v723_v49 }
 0x12a   :  { %v787_v23 = vpack.c.bf16 %v755_v21, %v755_v21  ;;  %v740_v24 = vsel %vm580_vm1, %v548_v57, %v708_v22 }
 0x12b   :  { %v772_v20 = vpack.c.bf16 %v740_v24, %v740_v24 }
 0x12c   :  { %v1153_v26 = vpop.eup %1152  ;;  %820 = vst.msk [vmem:[%s1680_s4 + $0x78] sm:$0xf] %vm789_vm2, %v787_v23 }
 0x12d   :  { %v1037_v28 = vadd.f32 -1.0, %v1153_v26  ;;  %805 = vst.msk [vmem:[%s1680_s4 + $0x3c] sm:$0xf] %vm789_vm2, %v772_v20 }
 0x12f   :  { %v724_v9 = vmul.f32 1.1111112, %v1037_v28 }
 0x131   :  { %v756_v29 = vsel %vm596_vm3, %v564_v13, %v724_v9 }
 0x132   :  { %v788_v30 = vpack.c.bf16 %v756_v29, %v756_v29 }
 0x134   :  { %821 = vst.msk [vmem:[%s1680_s4 + $0x7c] sm:$0xf] %vm789_vm2, %v788_v30 }

</bundles_post_ra>
